<compile_context>
chip_gen: v6e
topology: v6e:2x2x1
jax: 0.10.0
libtpu: 0.0.40
codegen_flags: <defaults>
</compile_context>

<pallas_src>
import functools

import numpy as np
import jax
import jax.numpy as jnp
from jax import lax
from jax.experimental import pallas as pl
from jax.experimental.pallas import tpu as pltpu


def _cbam_kernel(x_ref, w1t_ref, w2t_ref, cmat_ref, o_ref):
    # x_ref: (B, C, HW) f32, lane-dense (HW is a multiple of 128).
    x = x_ref[...].astype(jnp.float32)                     # (B, C, HW)
    B = x.shape[0]

    # ---- channel attention: global max / avg pool over spatial (lane reduce) ----
    mx = jnp.max(x, axis=2)                                # (B, C)
    av = jnp.mean(x, axis=2)                               # (B, C)
    v = jnp.concatenate([mx, av], axis=0)                  # (2B, C): one batched MLP pass

    w1t = w1t_ref[...]                                     # (C, C) = W1.T (pre-transposed)
    w2t = w2t_ref[...]                                     # (C, C) = W2.T
    h = jnp.maximum(jnp.dot(v, w1t, preferred_element_type=jnp.float32), 0.0)
    o = jnp.dot(h, w2t, preferred_element_type=jnp.float32)  # (2B, C)
    ch = jax.nn.sigmoid(o[:B] + o[B:])                     # (B, C) channel gate
    xc = x * ch[:, :, None]                                # (B, C, HW) lane broadcast

    # ---- spatial attention ----
    smax = jnp.max(xc, axis=1)                             # (B, HW) channel-max map
    savg = jnp.mean(xc, axis=1)                            # (B, HW) channel-mean map
    s = jnp.concatenate([smax, savg], axis=1)              # (B, 2*HW)

    # 7x7 "same" conv over the 2-channel map, pre-folded into one dense operator
    # matrix (built host-side in the wrapper): conv = [smax|savg] @ cmat.
    conv = jnp.dot(s.astype(cmat_ref.dtype), cmat_ref[...],
                   preferred_element_type=jnp.float32)     # (B, HW), single MXU matmul
    sp = jax.nn.sigmoid(conv)                              # (B, HW) spatial gate

    # ---- apply spatial gate; lane-dense store (HW = 256 lanes) ----
    o_ref[...] = (xc * sp[:, None, :]).astype(o_ref.dtype)


@functools.lru_cache(maxsize=8)
def _conv_operator_bf16(w_bytes, K, H, W):
    """Host-side (numpy) build of the dense conv operator.

    Returns cmat (2*HW, HW) bf16 such that, for flattened (H*W,) maps,
        conv_flat = smax_flat @ cmat[:HW] + savg_flat @ cmat[HW:]
    equals a KxK cross-correlation with 'same' zero padding over the 2-channel
    input [max_map, avg_map].  Built once per unique weight (lru_cache)."""
    w = np.frombuffer(w_bytes, dtype=np.float32).reshape(2, K, K)
    r = K // 2
    HW = H * W
    ii, jj = np.meshgrid(np.arange(H), np.arange(W), indexing="ij")
    dst = (ii * W + jj).reshape(-1)                        # (HW,)
    M = np.zeros((2, HW, HW), np.float32)
    for c in range(2):
        for ky in range(K):
            for kx in range(K):
                si = (ii + ky - r).reshape(-1)
                sj = (jj + kx - r).reshape(-1)
                valid = (si >= 0) & (si < H) & (sj >= 0) & (sj < W)
                src = si[valid] * W + sj[valid]
                np.add.at(M[c], (src, dst[valid]), w[c, ky, kx])
    cmat = np.concatenate([M[0], M[1]], axis=0)            # (2*HW, HW)
    return jnp.asarray(cmat, dtype=jnp.bfloat16)


def cbam_forward(x_nchw, w_mlp1, w_mlp2, w_spatial):
    """x_nchw: (B, C, H, W) float32.
    w_mlp1/w_mlp2: (C, C)  -- Conv2d(C, C, 1, bias=False).weight[:, :, 0, 0].
    w_spatial: (1, 2, 7, 7) -- Conv2d(2, 1, 7, padding=3, bias=False).weight."""
    B, C, H, W = x_nchw.shape
    HW = H * W
    K = int(w_spatial.shape[-1])

    x_flat = x_nchw.reshape(B, C, HW)                      # free reshape, no transpose

    # Host-built, cached, bf16 conv operator (the dominant byte mover).
    w_np = np.asarray(jax.device_get(w_spatial), np.float32)[0]  # (2, K, K)
    cmat = _conv_operator_bf16(w_np.tobytes(), K, H, W)          # (2*HW, HW) bf16

    # Pre-transpose the 1x1-conv MLP weights so the kernel needs no transpose.
    w1t = w_mlp1.T
    w2t = w_mlp2.T

    out_flat = pl.pallas_call(
        _cbam_kernel,
        out_shape=jax.ShapeDtypeStruct((B, C, HW), x_nchw.dtype),
        grid_spec=pltpu.PrefetchScalarGridSpec(
            num_scalar_prefetch=0,
            grid=(1,),                                     # single step: whole batch at once
            in_specs=[
                pl.BlockSpec((B, C, HW), lambda i: (0, 0, 0)),   # x (lane-dense)
                pl.BlockSpec((C, C), lambda i: (0, 0)),          # mlp W1.T
                pl.BlockSpec((C, C), lambda i: (0, 0)),          # mlp W2.T
                pl.BlockSpec((2 * HW, HW), lambda i: (0, 0)),    # folded 7x7 conv operator (bf16)
            ],
            out_specs=pl.BlockSpec((B, C, HW), lambda i: (0, 0, 0)),
        ),
        compiler_params=pltpu.CompilerParams(dimension_semantics=("arbitrary",)),
    )(x_flat, w1t, w2t, cmat)

    return out_flat.reshape(B, C, H, W)


def reference(x, w_mlp1, w_mlp2, w_spatial):
    """Pure-JAX CBAM forward matching the PyTorch module (channel<=16 -> reduction=1)."""
    maxp = jnp.max(x, axis=(2, 3))                         # (B, C)
    avgp = jnp.mean(x, axis=(2, 3))                        # (B, C)

    def mlp(v):                                            # Conv2d weights: out = v @ W.T
        return jnp.maximum(v @ w_mlp1.T, 0.0) @ w_mlp2.T

    ch = jax.nn.sigmoid(mlp(maxp) + mlp(avgp))             # (B, C)
    xc = x * ch[:, :, None, None]

    mx = jnp.max(xc, axis=1, keepdims=True)                # (B, 1, H, W)
    av = jnp.mean(xc, axis=1, keepdims=True)               # (B, 1, H, W)
    cat = jnp.concatenate([mx, av], axis=1)                # (B, 2, H, W)
    conv = lax.conv_general_dilated(cat, w_spatial, (1, 1), [(3, 3), (3, 3)],
                                    dimension_numbers=('NCHW', 'OIHW', 'NCHW'))
    sp = jax.nn.sigmoid(conv)                              # (B, 1, H, W)
    return xc * sp


if __name__ == "__main__":
    B, C, H, W = 2, 8, 16, 16                              # channel <= 16 -> reduction = 1

    key = jax.random.PRNGKey(0)
    k0, k1, k2, k3 = jax.random.split(key, 4)

    x = jax.random.normal(k0, (B, C, H, W), jnp.float32)
    # Channel-attention MLP: Conv2d(C, C//1, 1, bias=False) -> ReLU -> Conv2d(C//1, C, 1, bias=False)
    w_mlp1 = jax.random.normal(k1, (C, C), jnp.float32) * 0.3
    w_mlp2 = jax.random.normal(k2, (C, C), jnp.float32) * 0.3
    # Spatial-attention conv: Conv2d(2, 1, kernel_size=7, padding=3, bias=False)
    w_spatial = jax.random.normal(k3, (1, 2, 7, 7), jnp.float32) * 0.1

    out = cbam_forward(x, w_mlp1, w_mlp2, w_spatial)
    out = jax.block_until_ready(out)

    ref = reference(x, w_mlp1, w_mlp2, w_spatial)
    ref = jax.block_until_ready(ref)

    assert out.shape == x.shape
    max_err = float(jnp.max(jnp.abs(out - ref)))
    # Loose tolerance: the kernel's folded conv runs with a bf16-stored operator
    # (MXU default precision is bf16 anyway); structural errors would be orders
    # of magnitude larger than this.
    if max_err > 1e-2:
        raise AssertionError(f"mismatch vs reference, max abs err = {max_err}")

    print("KERNEL_OK")
</pallas_src>

<mosaic_0001>
module attributes {stable_mosaic.version = 11 : i64} {
  func.func @_cbam_kernel(%arg0: i32, %arg1: memref<2x8x256xf32, #tpu.memory_space<vmem>>, %arg2: memref<8x8xf32, #tpu.memory_space<vmem>>, %arg3: memref<8x8xf32, #tpu.memory_space<vmem>>, %arg4: memref<512x256xbf16, #tpu.memory_space<vmem>>, %arg5: memref<2x8x256xf32, #tpu.memory_space<vmem>>) attributes {dimension_semantics = [#tpu.dimension_semantics<arbitrary>], iteration_bounds = array<i64: 1>, scalar_prefetch = 0 : i64, scratch_operands = 0 : i64, tpu.core_type = #tpu.core_type<tc>, window_params = [{pipeline_mode = #tpu.pipeline_mode<synchronous>, transform_indices = @transform_0, window_bounds = array<i64: 2, 8, 256>}, {pipeline_mode = #tpu.pipeline_mode<synchronous>, transform_indices = @transform_1, window_bounds = array<i64: 8, 8>}, {pipeline_mode = #tpu.pipeline_mode<synchronous>, transform_indices = @transform_2, window_bounds = array<i64: 8, 8>}, {pipeline_mode = #tpu.pipeline_mode<synchronous>, transform_indices = @transform_3, window_bounds = array<i64: 512, 256>}, {pipeline_mode = #tpu.pipeline_mode<synchronous>, transform_indices = @transform_4, window_bounds = array<i64: 2, 8, 256>}]} {
    %c0 = arith.constant 0 : index
    %c0_0 = arith.constant 0 : index
    %c0_1 = arith.constant 0 : index
    %0 = vector.load %arg1[%c0, %c0_0, %c0_1] : memref<2x8x256xf32, #tpu.memory_space<vmem>>, vector<2x8x256xf32>
    %cst = arith.constant dense<0xFF800000> : vector<2x8xf32>
    %1 = vector.multi_reduction <maximumf>, %0, %cst [2] : vector<2x8x256xf32> to vector<2x8xf32>
    %cst_2 = arith.constant dense<0.000000e+00> : vector<2x8xf32>
    %2 = vector.multi_reduction <add>, %0, %cst_2 [2] : vector<2x8x256xf32> to vector<2x8xf32>
    %cst_3 = arith.constant 2.560000e+02 : f32
    %3 = vector.broadcast %cst_3 : f32 to vector<2x8xf32>
    %4 = arith.divf %2, %3 : vector<2x8xf32>
    %5 = tpu.concatenate %1, %4 in 0 : vector<2x8xf32>, vector<2x8xf32> -> vector<4x8xf32>
    %c0_4 = arith.constant 0 : index
    %c0_5 = arith.constant 0 : index
    %6 = vector.load %arg2[%c0_4, %c0_5] : memref<8x8xf32, #tpu.memory_space<vmem>>, vector<8x8xf32>
    %c0_6 = arith.constant 0 : index
    %c0_7 = arith.constant 0 : index
    %7 = vector.load %arg3[%c0_6, %c0_7] : memref<8x8xf32, #tpu.memory_space<vmem>>, vector<8x8xf32>
    %cst_8 = arith.constant dense<0.000000e+00> : vector<4x8xf32>
    %8 = tpu.matmul %5, %6, %cst_8 {dimension_numbers = #tpu.dot_dimension_numbers<[1], [0], [0], [1], [0, 0, 1, 1], [], []>} : vector<4x8xf32>, vector<8x8xf32>, vector<4x8xf32> -> vector<4x8xf32>
    %cst_9 = arith.constant 0.000000e+00 : f32
    %9 = vector.broadcast %cst_9 : f32 to vector<4x8xf32>
    %10 = arith.maximumf %8, %9 : vector<4x8xf32>
    %cst_10 = arith.constant dense<0.000000e+00> : vector<4x8xf32>
    %11 = tpu.matmul %10, %7, %cst_10 {dimension_numbers = #tpu.dot_dimension_numbers<[1], [0], [0], [1], [0, 0, 1, 1], [], []>} : vector<4x8xf32>, vector<8x8xf32>, vector<4x8xf32> -> vector<4x8xf32>
    %12 = vector.extract_strided_slice %11 {offsets = [0, 0], sizes = [2, 8], strides = [1, 1]} : vector<4x8xf32> to vector<2x8xf32>
    %13 = vector.extract_strided_slice %11 {offsets = [2, 0], sizes = [2, 8], strides = [1, 1]} : vector<4x8xf32> to vector<2x8xf32>
    %14 = arith.addf %12, %13 : vector<2x8xf32>
    %15 = arith.negf %14 : vector<2x8xf32>
    %16 = math.exp %15 : vector<2x8xf32>
    %cst_11 = arith.constant 1.000000e+00 : f32
    %17 = vector.broadcast %cst_11 : f32 to vector<2x8xf32>
    %18 = arith.addf %17, %16 : vector<2x8xf32>
    %19 = arith.divf %17, %18 : vector<2x8xf32>
    %20 = vector.shape_cast %19 : vector<2x8xf32> to vector<2x8x1xf32>
    %21 = vector.broadcast %20 : vector<2x8x1xf32> to vector<2x8x256xf32>
    %22 = arith.mulf %0, %21 : vector<2x8x256xf32>
    %cst_12 = arith.constant dense<0xFF800000> : vector<2x256xf32>
    %23 = vector.multi_reduction <maximumf>, %22, %cst_12 [1] : vector<2x8x256xf32> to vector<2x256xf32>
    %cst_13 = arith.constant dense<0.000000e+00> : vector<2x256xf32>
    %24 = vector.multi_reduction <add>, %22, %cst_13 [1] : vector<2x8x256xf32> to vector<2x256xf32>
    %cst_14 = arith.constant 8.000000e+00 : f32
    %25 = vector.broadcast %cst_14 : f32 to vector<2x256xf32>
    %26 = arith.divf %24, %25 : vector<2x256xf32>
    %27 = tpu.concatenate %23, %26 in 1 : vector<2x256xf32>, vector<2x256xf32> -> vector<2x512xf32>
    %28 = arith.truncf %27 : vector<2x512xf32> to vector<2x512xbf16>
    %c0_15 = arith.constant 0 : index
    %c0_16 = arith.constant 0 : index
    %29 = vector.load %arg4[%c0_15, %c0_16] : memref<512x256xbf16, #tpu.memory_space<vmem>>, vector<512x256xbf16>
    %cst_17 = arith.constant dense<0.000000e+00> : vector<2x256xf32>
    %30 = tpu.matmul %28, %29, %cst_17 {dimension_numbers = #tpu.dot_dimension_numbers<[1], [0], [0], [1], [0, 0, 1, 1], [], []>} : vector<2x512xbf16>, vector<512x256xbf16>, vector<2x256xf32> -> vector<2x256xf32>
    %31 = arith.negf %30 : vector<2x256xf32>
    %32 = math.exp %31 : vector<2x256xf32>
    %cst_18 = arith.constant 1.000000e+00 : f32
    %33 = vector.broadcast %cst_18 : f32 to vector<2x256xf32>
    %34 = arith.addf %33, %32 : vector<2x256xf32>
    %35 = arith.divf %33, %34 : vector<2x256xf32>
    %36 = vector.shape_cast %35 : vector<2x256xf32> to vector<2x1x256xf32>
    %37 = vector.broadcast %36 : vector<2x1x256xf32> to vector<2x8x256xf32>
    %38 = arith.mulf %22, %37 : vector<2x8x256xf32>
    %c0_19 = arith.constant 0 : index
    %c0_20 = arith.constant 0 : index
    %c0_21 = arith.constant 0 : index
    %39 = vector.load %arg5[%c0_19, %c0_20, %c0_21] : memref<2x8x256xf32, #tpu.memory_space<vmem>>, vector<2x8x256xf32>
    tpu.vector_store %arg5[%c0_19, %c0_20, %c0_21], %38 {strides = array<i32>} : memref<2x8x256xf32, #tpu.memory_space<vmem>>, vector<2x8x256xf32>,
    return
  }
  func.func @transform_0(%arg0: i32) -> (i32, i32, i32) {
    %c0_i32 = arith.constant 0 : i32
    %c0_i32_0 = arith.constant 0 : i32
    %c0_i32_1 = arith.constant 0 : i32
    %c0_i32_2 = arith.constant 0 : i32
    return %c0_i32, %c0_i32_0, %c0_i32_1 : i32, i32, i32
  }
  func.func @transform_1(%arg0: i32) -> (i32, i32) {
    %c0_i32 = arith.constant 0 : i32
    %c0_i32_0 = arith.constant 0 : i32
    %c0_i32_1 = arith.constant 0 : i32
    return %c0_i32, %c0_i32_0 : i32, i32
  }
  func.func @transform_2(%arg0: i32) -> (i32, i32) {
    %c0_i32 = arith.constant 0 : i32
    %c0_i32_0 = arith.constant 0 : i32
    %c0_i32_1 = arith.constant 0 : i32
    return %c0_i32, %c0_i32_0 : i32, i32
  }
  func.func @transform_3(%arg0: i32) -> (i32, i32) {
    %c0_i32 = arith.constant 0 : i32
    %c0_i32_0 = arith.constant 0 : i32
    %c0_i32_1 = arith.constant 0 : i32
    return %c0_i32, %c0_i32_0 : i32, i32
  }
  func.func @transform_4(%arg0: i32) -> (i32, i32, i32) {
    %c0_i32 = arith.constant 0 : i32
    %c0_i32_0 = arith.constant 0 : i32
    %c0_i32_1 = arith.constant 0 : i32
    %c0_i32_2 = arith.constant 0 : i32
    return %c0_i32, %c0_i32_0, %c0_i32_1 : i32, i32, i32
  }
}

</mosaic_0001>

<bundles_post_ra>
// kernel: tpu_custom_call.1
= control target key start
LH: loop header
LB: loop body
LE: loop exit
PB: predicated region body
PF: predicated region fallthrough
CT: control target
= control target key end

     0   :  { %9 = vsyncpa [#allocation3], 0  ;;  %s1353_s0 = inlined_call_operand.hbm [shape: f32[2,8,256], index: 0, kind: input, shape index: {}]   ;;  %s1354_s1 = inlined_call_operand.hbm [shape: f32[8,8], index: 1, kind: input, shape index: {}]   ;;  %s1355_s2 = inlined_call_operand.hbm [shape: f32[8,8], index: 2, kind: input, shape index: {}]   ;;  %s1356_s3 = inlined_call_operand.hbm [shape: bf16[512,256], index: 3, kind: input, shape index: {}]   ;;  %s1357_s4 = inlined_call_operand.hbm [shape: f32[2,8,256], index: 4, kind: output, shape index: {}]  }
   0x1   :  { %10 = vsyncpa [#allocation6], 0 }
   0x2   :  { %11 = vsyncpa [#allocation9], 0 }
   0x3   :  { %12 = vsyncpa [#allocation4], 0  ;;  %s1230_s15 = smov [#allocation5]   ;;  %s1231_s17 = smov [#allocation2]  }
   0x4   :  { %s31_s16 = sshll.u32 %s1230_s15, 4  ;;  %s18_s18 = sshll.u32 %s1231_s17, 4  ;;  %s32_s16 = int_to_ptr.vmem [resolvable:$true] %s31_s16  ;;  %s19_s18 = int_to_ptr.vmem [resolvable:$true] %s18_s18 }
   0x5   :  { %s1130_s19 = scalar_lea.vmem %s32_s16, 128  ;;  %p1135_p1 = scmp.lt.s32.totalorder %s32_s16, %s32_s16 }
   0x6   :  { %p1131_p0 = scmp.ne.s32.totalorder %s32_s16, %s1130_s19  ;;  %p1136_p2 = scmp.lt.s32.totalorder %s1130_s19, %s1130_s19 }
   0x8   :  { %p1137_p3 = por %p1136_p2, %p1135_p1 }
   0xa   :  { %p1138_p4 = pnand %p1137_p3, %p1131_p0 }
   0xc   :  { %1141 = shalt.err (!%p1138_p4)
}
   0xd   :  { %34 = dma.hbm_to_vmem [thread:$0]  %s1354_s1, 128, %s32_s16, [#allocation6]  }
   0xe   :  { %s1150_s22 = scalar_lea.vmem %s19_s18, 512  ;;  %p1155_p6 = scmp.lt.s32.totalorder %s19_s18, %s19_s18 }
   0xf   :  { %p1151_p5 = scmp.ne.s32.totalorder %s19_s18, %s1150_s22  ;;  %p1156_p7 = scmp.lt.s32.totalorder %s1150_s22, %s1150_s22 }
  0x11   :  { %p1157_p8 = por %p1156_p7, %p1155_p6 }
  0x13   :  { %p1158_p9 = pnand %p1157_p8, %p1151_p5 }
  0x15   :  { %1161 = shalt.err (!%p1158_p9)
}
  0x16   :  { %s1232_s23 = smov 256   ;;  %s1233_s24 = smov 16  }
  0x17   :  { %24 = dma.hbm_to_vmem [thread:$0]  %s1353_s0, 512, %s19_s18, [#allocation3], %s1232_s23, %s1232_s23, %s1233_s24  }
  0x18   :  { %s1234_s27 = smov [#allocation7]   ;;  %s1235_s29 = smov [#allocation8]  }
  0x19   :  { %s41_s28 = sshll.u32 %s1234_s27, 4  ;;  %s50_s1 = sshll.u32 %s1235_s29, 4  ;;  %s42_s28 = int_to_ptr.vmem [resolvable:$true] %s41_s28  ;;  %s51_s1 = int_to_ptr.vmem [resolvable:$true] %s50_s1 }
  0x1a   :  { %s1170_s30 = scalar_lea.vmem %s42_s28, 128  ;;  %p1175_p11 = scmp.lt.s32.totalorder %s42_s28, %s42_s28 }
  0x1b   :  { %p1171_p10 = scmp.ne.s32.totalorder %s42_s28, %s1170_s30  ;;  %p1176_p12 = scmp.lt.s32.totalorder %s1170_s30, %s1170_s30 }
  0x1d   :  { %p1177_p13 = por %p1176_p12, %p1175_p11 }
  0x1f   :  { %p1178_p0 = pnand %p1177_p13, %p1171_p10 }
  0x21   :  { %1181 = shalt.err (!%p1178_p0)
}
  0x22   :  { %44 = dma.hbm_to_vmem [thread:$0]  %s1355_s2, 128, %s42_s28, [#allocation6]  }
  0x23   :  { %s1190_s7 = scalar_lea.vmem %s51_s1, 8192  ;;  %p1195_p2 = scmp.lt.s32.totalorder %s51_s1, %s51_s1 }
  0x24   :  { %p1191_p1 = scmp.ne.s32.totalorder %s51_s1, %s1190_s7  ;;  %p1196_p3 = scmp.lt.s32.totalorder %s1190_s7, %s1190_s7 }
  0x26   :  { %p1197_p4 = por %p1196_p3, %p1195_p2 }
  0x28   :  { %p1198_p5 = pnand %p1197_p4, %p1191_p1 }
  0x2a   :  { %1201 = shalt.err (!%p1198_p5)
}
  0x2b   :  { %s1236_s0 = smov 128   ;;  %s1237_s8 = smov 8  }
  0x2c   :  { %56 = dma.hbm_to_vmem [thread:$0]  %s1356_s3, 8192, %s51_s1, [#allocation9], %s1236_s0, %s1236_s0, %s1237_s8  }
  0x2d   :  { %1222 = dma.done.wait [#allocation3], 512  }
  0x2e   :  { %1223 = vsyncadd [#allocation3], 4294966784 }
  0x2f   :  { %1224 = dma.done.wait [#allocation6], 256  }
  0x30   :  { %1225 = vsyncadd [#allocation6], 4294967040 }
  0x31   :  { %1226 = dma.done.wait [#allocation9], 8192  }
  0x32   :  { %1227 = vsyncadd [#allocation9], 4294959104  ;;  %v1282_v0 = vld [vmem:[#allocation2] sm:$0xff]  ;;  %v1284_v1 = vld [vmem:[#allocation2 + $0x8] sm:$0xff]  ;;  %v1238_v9 = vmov 0.0   ;;  %vm1239_vm0 = vmmov 0   ;;  %v90_v10 = vlaneseq }
  0x33   :  { %v1286_v2 = vld [vmem:[#allocation2 + $0x10] sm:$0xff]  ;;  %v79_v3 = vadd.f32 %v1284_v1, %v1282_v0  ;;  %v73_v4 = vmax.f32 %v1282_v0, %v1284_v1  ;;  %v1292_v5 = vld [vmem:[#allocation2 + $0x18] sm:$0xff]  ;;  %v118_v8 = vld [vmem:[#allocation5] sm:$0xff]  ;;  %992 = vmatprep.subr.mxu0 %v1238_v9  ;;  %994 = vmatprep.mubr.msk.f32.mxu0 %vm1239_vm0, %v1238_v9  ;;  %vm100_vm1 = vcmask 1041409   ;;  %vm113_vm2 = vcmask 1043459   ;;  %s1241_s2 = smov [#allocation10]  }
  0x34   :  { %v82_v6 = vadd.f32 %v1292_v5, %v1286_v2  ;;  %v76_v7 = vmax.f32 %v1286_v2, %v1292_v5  ;;  %993 = vmatpush3.msra.mxu0 %v118_v8  ;;  %997 = vmatprep.subr.mxu1 %v1238_v9  ;;  %v91_v11 = vand.u32 127, %v90_v10  ;;  %v1298_v12 = vshrl.u32 %v90_v10, 7  ;;  %v119_v27 = vld [vmem:[#allocation7] sm:$0xff]  ;;  %v1022_v35 = vld [vmem:[#allocation8 + $0x64] ss:$8 sps:$4 sm:$0xff]   ;;  %s905_s3 = sshll.u32 %s1241_s2, 4  ;;  %s906_s3 = int_to_ptr.vmem [resolvable:$true] %s905_s3 }
  0x35   :  { %80 = vadd.xlane.f32.xlu0 %v79_v3  ;;  %74 = vmax.xlane.f32.xlu1 %v73_v4  ;;  %vm116_vm3 = vcmask 1041408   ;;  %vm120_vm4 = vcmask 64512   ;;  %v1014_v31 = vld [vmem:[#allocation8 + $0x70] ss:$8 sps:$4 sm:$0xff]   ;;  %v1016_v32 = vld [vmem:[#allocation8 + $0x74] ss:$8 sps:$4 sm:$0xff]   ;;  %p1207_p7 = scmp.lt.s32.totalorder %s906_s3, %s906_s3 }
  0x36   :  { %999 = vmatprep.mubr.msk.f32.mxu1 %vm1239_vm0, %v1238_v9  ;;  %v94_v15 = vsub.s32 %v91_v11, %v1298_v12  ;;  %998 = vmatpush3.msra.mxu1 %v119_v27  ;;  %v1017_v33 = vld [vmem:[#allocation8 + $0x170] ss:$8 sps:$4 sm:$0xff]   ;;  %v1019_v34 = vld [vmem:[#allocation8 + $0x174] ss:$8 sps:$4 sm:$0xff]   ;;  %v1025_v36 = vld [vmem:[#allocation8 + $0x164] ss:$8 sps:$4 sm:$0xff]  }
  0x37   :  { %753 = vmatprep.subr.bf16.mxu0 %v1016_v32  ;;  %794 = vmatprep.subr.bf16.mxu1 %v1019_v34  ;;  %v1020_v37 = vld [vmem:[#allocation8 + $0x60] ss:$8 sps:$4 sm:$0xff]   ;;  %v1028_v39 = vld [vmem:[#allocation8 + $0x54] ss:$8 sps:$4 sm:$0xff]   ;;  %v1026_v41 = vld [vmem:[#allocation8 + $0x50] ss:$8 sps:$4 sm:$0xff]  }
  0x38   :  { %v1023_v38 = vld [vmem:[#allocation8 + $0x160] ss:$8 sps:$4 sm:$0xff]   ;;  %v1031_v40 = vld [vmem:[#allocation8 + $0x154] ss:$8 sps:$4 sm:$0xff]   ;;  %v1029_v42 = vld [vmem:[#allocation8 + $0x150] ss:$8 sps:$4 sm:$0xff]  }
  0x39   :  { %83 = vadd.xlane.f32.xlu0 %v82_v6  ;;  %77 = vmax.xlane.f32.xlu1 %v76_v7  ;;  %v1034_v43 = vld [vmem:[#allocation8 + $0x44] ss:$8 sps:$4 sm:$0xff]   ;;  %v1032_v45 = vld [vmem:[#allocation8 + $0x40] ss:$8 sps:$4 sm:$0xff]   ;;  %v1040_v47 = vld [vmem:[#allocation8 + $0x34] ss:$8 sps:$4 sm:$0xff]  }
  0x3a   :  { %v1037_v44 = vld [vmem:[#allocation8 + $0x144] ss:$8 sps:$4 sm:$0xff]   ;;  %v1035_v46 = vld [vmem:[#allocation8 + $0x140] ss:$8 sps:$4 sm:$0xff]   ;;  %v1043_v48 = vld [vmem:[#allocation8 + $0x134] ss:$8 sps:$4 sm:$0xff]  }
  0x3b   :  { %v1038_v49 = vld [vmem:[#allocation8 + $0x30] ss:$8 sps:$4 sm:$0xff]   ;;  %v1046_v51 = vld [vmem:[#allocation8 + $0x24] ss:$8 sps:$4 sm:$0xff]   ;;  %v1044_v53 = vld [vmem:[#allocation8 + $0x20] ss:$8 sps:$4 sm:$0xff]  }
  0x3c   :  { %v1041_v50 = vld [vmem:[#allocation8 + $0x130] ss:$8 sps:$4 sm:$0xff]   ;;  %v1049_v52 = vld [vmem:[#allocation8 + $0x124] ss:$8 sps:$4 sm:$0xff]   ;;  %v1047_v54 = vld [vmem:[#allocation8 + $0x120] ss:$8 sps:$4 sm:$0xff]  }
  0x3d   :  { %v1052_v55 = vld [vmem:[#allocation8 + $0x14] ss:$8 sps:$4 sm:$0xff]   ;;  %v1050_v57 = vld [vmem:[#allocation8 + $0x10] ss:$8 sps:$4 sm:$0xff]   ;;  %v1058_v59 = vld [vmem:[#allocation8 + $0x4] ss:$8 sps:$4 sm:$0xff]  }
  0x3e   :  { %v1055_v56 = vld [vmem:[#allocation8 + $0x114] ss:$8 sps:$4 sm:$0xff]   ;;  %v1053_v58 = vld [vmem:[#allocation8 + $0x110] ss:$8 sps:$4 sm:$0xff]   ;;  %v1061_v60 = vld [vmem:[#allocation8 + $0x104] ss:$8 sps:$4 sm:$0xff]  }
  0x3f   :  { %v1056_v61 = vld [vmem:[#allocation8] ss:$8 sps:$4 sm:$0xff]   ;;  %v1064_v63 = vld [vmem:[#allocation8 + $0xf4] ss:$8 sps:$4 sm:$0xff]   ;;  %v1062_v4 = vld [vmem:[#allocation8 + $0xf0] ss:$8 sps:$4 sm:$0xff]  }
  0x40   :  { %v1059_v62 = vld [vmem:[#allocation8 + $0x100] ss:$8 sps:$4 sm:$0xff]   ;;  %v1067_v3 = vld [vmem:[#allocation8 + $0x1f4] ss:$8 sps:$4 sm:$0xff]   ;;  %v1065_v6 = vld [vmem:[#allocation8 + $0x1f0] ss:$8 sps:$4 sm:$0xff]  }
  0x41   :  { %v1070_v7 = vld [vmem:[#allocation8 + $0xe4] ss:$8 sps:$4 sm:$0xff]   ;;  %v1068_v9 = vld [vmem:[#allocation8 + $0xe0] ss:$8 sps:$4 sm:$0xff]   ;;  %v1076_v11 = vld [vmem:[#allocation8 + $0xd4] ss:$8 sps:$4 sm:$0xff]  }
  0x42   :  { %v1073_v8 = vld [vmem:[#allocation8 + $0x1e4] ss:$8 sps:$4 sm:$0xff]   ;;  %v1071_v10 = vld [vmem:[#allocation8 + $0x1e0] ss:$8 sps:$4 sm:$0xff]   ;;  %v1088_v27 = vld [vmem:[#allocation8 + $0xb4] ss:$8 sps:$4 sm:$0xff]  }
  0x43   :  { %v1092_v32 = vld [vmem:[#allocation8 + $0xa0] ss:$8 sps:$4 sm:$0xff]   ;;  %v1306_v34 = vsub.s32 0, %v1298_v12  ;;  %s1202_s11 = scalar_lea.vmem %s906_s3, 512 }
  0x44   :  { %p1203_p6 = scmp.ne.s32.totalorder %s906_s3, %s1202_s11  ;;  %p1208_p8 = scmp.lt.s32.totalorder %s1202_s11, %s1202_s11 }
  0x46   :  { %p1209_p9 = por %p1208_p8, %p1207_p7 }
  0x48   :  { %p1210_p10 = pnand %p1209_p9, %p1203_p6 }
  0xbe   :  { %v81_v13 = vpop.xlane.xlu0 %80  ;;  %v75_v14 = vpop.xlane.xlu1 %74 }
  0xbf   :  { %v86_v16 = vmul.f32 0.00390625, %v81_v13  ;;  %v95_v22 = vrot.slane %v75_v14, %v94_v15  ;;  %v1079_v13 = vld [vmem:[#allocation8 + $0x1d4] ss:$8 sps:$4 sm:$0xff]   ;;  %v1074_v14 = vld [vmem:[#allocation8 + $0xd0] ss:$8 sps:$4 sm:$0xff]  }
  0xc1   :  { %v108_v21 = vrot.slane %v86_v16, %v94_v15  ;;  %v1082_v16 = vld [vmem:[#allocation8 + $0xc4] ss:$8 sps:$4 sm:$0xff]  }
  0xc2   :  { %v84_v17 = vpop.xlane.xlu0 %83  ;;  %v78_v18 = vpop.xlane.xlu1 %77 }
  0xc3   :  { %v87_v19 = vmul.f32 0.00390625, %v84_v17  ;;  %v99_v20 = vrot.slane %v78_v18, %v94_v15  ;;  %v1080_v17 = vld [vmem:[#allocation8 + $0xc0] ss:$8 sps:$4 sm:$0xff]  }
  0xc5   :  { %v112_v23 = vrot.slane %v87_v19, %v94_v15  ;;  %v101_v24 = vsel %vm100_vm1, %v99_v20, %v95_v22  ;;  %v1077_v15 = vld [vmem:[#allocation8 + $0x1d0] ss:$8 sps:$4 sm:$0xff]  }
  0xc7   :  { %v114_v25 = vsel %vm113_vm2, %v112_v23, %v108_v21 }
  0xc8   :  { %v117_v26 = vsel %vm116_vm3, %v101_v24, %v114_v25  ;;  %v1085_v25 = vld [vmem:[#allocation8 + $0x1c4] ss:$8 sps:$4 sm:$0xff]  }
  0xc9   :  { %995 = vmatmul.mubr.msk.f32.vlgmr.msra.gmra.mxu0 %vm120_vm4, %v117_v26  ;;  %v1083_v26 = vld [vmem:[#allocation8 + $0x1c0] ss:$8 sps:$4 sm:$0xff]  }
  0xca   :  { %754 = vmatpush1.bf16.msra.mxu0 %v1014_v31  ;;  %v1094_v31 = vld [vmem:[#allocation8 + $0xa4] ss:$8 sps:$4 sm:$0xff]  }
  0xcb   :  { %755 = vmatprep.subr.bf16.mxu0 %v1022_v35  ;;  %v1097_v35 = vld [vmem:[#allocation8 + $0x1a4] ss:$8 sps:$4 sm:$0xff]  }
  0xce   :  { %756 = vmatpush1.bf16.msra.mxu0 %v1020_v37  ;;  %v1100_v37 = vld [vmem:[#allocation8 + $0x94] ss:$8 sps:$4 sm:$0xff]  }
  0xcf   :  { %757 = vmatprep.subr.bf16.mxu0 %v1028_v39  ;;  %v1098_v39 = vld [vmem:[#allocation8 + $0x90] ss:$8 sps:$4 sm:$0xff]  }
  0xd2   :  { %758 = vmatpush1.bf16.msra.mxu0 %v1026_v41 }
  0xd3   :  { %759 = vmatprep.subr.bf16.mxu0 %v1034_v43  ;;  %v1101_v43 = vld [vmem:[#allocation8 + $0x190] ss:$8 sps:$4 sm:$0xff]  }
  0xd6   :  { %760 = vmatpush1.bf16.msra.mxu0 %v1032_v45  ;;  %v1106_v45 = vld [vmem:[#allocation8 + $0x84] ss:$8 sps:$4 sm:$0xff]  }
  0xd7   :  { %761 = vmatprep.subr.bf16.mxu0 %v1040_v47  ;;  %v1107_v47 = vld [vmem:[#allocation8 + $0x180] ss:$8 sps:$4 sm:$0xff]  }
  0xda   :  { %762 = vmatpush1.bf16.msra.mxu0 %v1038_v49 }
  0xdb   :  { %763 = vmatprep.subr.bf16.mxu0 %v1046_v51 }
  0xde   :  { %764 = vmatpush1.bf16.msra.mxu0 %v1044_v53 }
  0xdf   :  { %765 = vmatprep.subr.bf16.mxu0 %v1052_v55 }
  0xe2   :  { %766 = vmatpush1.bf16.msra.mxu0 %v1050_v57 }
  0xe3   :  { %767 = vmatprep.subr.bf16.mxu0 %v1058_v59 }
  0xe6   :  { %768 = vmatpush1.bf16.msra.mxu0 %v1056_v61 }
  0xe7   :  { %769 = vmatprep.subr.bf16.mxu0 %v1064_v63 }
  0xea   :  { %770 = vmatpush2.bf16.msra.mxu0 %v1062_v4 }
  0xeb   :  { %771 = vmatprep.subr.bf16.mxu0 %v1070_v7 }
  0xee   :  { %772 = vmatpush2.bf16.msra.mxu0 %v1068_v9 }
  0xef   :  { %773 = vmatprep.subr.bf16.mxu0 %v1076_v11 }
  0xf2   :  { %774 = vmatpush2.bf16.msra.mxu0 %v1074_v14 }
  0xf3   :  { %775 = vmatprep.subr.bf16.mxu0 %v1082_v16 }
  0xf6   :  { %776 = vmatpush2.bf16.msra.mxu0 %v1080_v17 }
  0xf7   :  { %777 = vmatprep.subr.bf16.mxu0 %v1088_v27 }
 0x189   :  { %v190_v28 = vpop.f32.mrf.mxu0 }
 0x18a   :  { %v194_v29 = vmax.f32 %v190_v28, 0.0  ;;  %v1086_v28 = vld [vmem:[#allocation8 + $0xb0] ss:$8 sps:$4 sm:$0xff]  }
 0x18b   :  { %v996_v30 = vpop.f32.mrf.mxu0  ;;  %778 = vmatpush2.bf16.msra.mxu0 %v1086_v28 }
 0x18c   :  { %1000 = vmatmul.mubr.msk.f32.vlgmr.msra.gmra.mxu1 %vm120_vm4, %v194_v29  ;;  %v1091_v29 = vld [vmem:[#allocation8 + $0x1b4] ss:$8 sps:$4 sm:$0xff]   ;;  %v1089_v30 = vld [vmem:[#allocation8 + $0x1b0] ss:$8 sps:$4 sm:$0xff]   ;;  %779 = vmatprep.subr.bf16.mxu0 %v1094_v31 }
 0x18d   :  { %795 = vmatpush1.bf16.msra.mxu1 %v1017_v33  ;;  %v1303_v33 = vsub.s32 1, %v1298_v12 }
 0x18e   :  { %796 = vmatprep.subr.bf16.mxu1 %v1025_v36  ;;  %v1095_v36 = vld [vmem:[#allocation8 + $0x1a0] ss:$8 sps:$4 sm:$0xff]  }
 0x18f   :  { %780 = vmatpush2.bf16.msra.mxu0 %v1092_v32 }
 0x190   :  { %781 = vmatprep.subr.bf16.mxu0 %v1100_v37 }
 0x191   :  { %797 = vmatpush1.bf16.msra.mxu1 %v1023_v38 }
 0x192   :  { %798 = vmatprep.subr.bf16.mxu1 %v1031_v40 }
 0x193   :  { %782 = vmatpush2.bf16.msra.mxu0 %v1098_v39 }
 0x194   :  { %783 = vmatprep.subr.bf16.mxu0 %v1106_v45 }
 0x195   :  { %799 = vmatpush1.bf16.msra.mxu1 %v1029_v42  ;;  %v1103_v42 = vld [vmem:[#allocation8 + $0x194] ss:$8 sps:$4 sm:$0xff]  }
 0x196   :  { %800 = vmatprep.subr.bf16.mxu1 %v1037_v44  ;;  %v1104_v44 = vld [vmem:[#allocation8 + $0x80] ss:$8 sps:$4 sm:$0xff]  }
 0x197   :  { %784 = vmatpush2.bf16.msra.mxu0 %v1104_v44 }
 0x199   :  { %801 = vmatpush1.bf16.msra.mxu1 %v1035_v46  ;;  %v1109_v46 = vld [vmem:[#allocation8 + $0x184] ss:$8 sps:$4 sm:$0xff]  }
 0x19a   :  { %802 = vmatprep.subr.bf16.mxu1 %v1043_v48 }
 0x19d   :  { %803 = vmatpush1.bf16.msra.mxu1 %v1041_v50 }
 0x19e   :  { %804 = vmatprep.subr.bf16.mxu1 %v1049_v52 }
 0x1a1   :  { %805 = vmatpush1.bf16.msra.mxu1 %v1047_v54 }
 0x1a2   :  { %806 = vmatprep.subr.bf16.mxu1 %v1055_v56 }
 0x1a5   :  { %807 = vmatpush1.bf16.msra.mxu1 %v1053_v58 }
 0x1a6   :  { %808 = vmatprep.subr.bf16.mxu1 %v1061_v60 }
 0x1a9   :  { %809 = vmatpush1.bf16.msra.mxu1 %v1059_v62 }
 0x1aa   :  { %810 = vmatprep.subr.bf16.mxu1 %v1067_v3 }
 0x1ad   :  { %811 = vmatpush2.bf16.msra.mxu1 %v1065_v6 }
 0x1ae   :  { %812 = vmatprep.subr.bf16.mxu1 %v1073_v8 }
 0x1b1   :  { %813 = vmatpush2.bf16.msra.mxu1 %v1071_v10 }
 0x1b2   :  { %814 = vmatprep.subr.bf16.mxu1 %v1079_v13 }
 0x1b5   :  { %815 = vmatpush2.bf16.msra.mxu1 %v1077_v15 }
 0x1b6   :  { %816 = vmatprep.subr.bf16.mxu1 %v1085_v25 }
 0x1b9   :  { %817 = vmatpush2.bf16.msra.mxu1 %v1083_v26 }
 0x1ba   :  { %818 = vmatprep.subr.bf16.mxu1 %v1091_v29 }
 0x1bd   :  { %819 = vmatpush2.bf16.msra.mxu1 %v1089_v30 }
 0x1be   :  { %820 = vmatprep.subr.bf16.mxu1 %v1097_v35 }
 0x1c1   :  { %821 = vmatpush2.bf16.msra.mxu1 %v1095_v36 }
 0x1c2   :  { %822 = vmatprep.subr.bf16.mxu1 %v1103_v42 }
 0x1c5   :  { %823 = vmatpush2.bf16.msra.mxu1 %v1101_v43 }
 0x1c6   :  { %824 = vmatprep.subr.bf16.mxu1 %v1109_v46 }
 0x1c9   :  { %825 = vmatpush2.bf16.msra.mxu1 %v1107_v47 }
 0x24c   :  { %v264_v18 = vpop.f32.mrf.mxu1 }
 0x24d   :  { %v269_v19 = vrot.slane %v264_v18, 2 }
 0x24e   :  { %v1001_v20 = vpop.f32.mrf.mxu1 }
 0x24f   :  { %v271_v21 = vadd.f32 %v269_v19, %v264_v18 }
 0x251   :  { %v921_v22 = vmul.f32 -1.442695, %v271_v21 }
 0x253   :  { %1110 = vpow2.f32 %v921_v22 }
 0x260   :  { %v1111_v23 = vpop.eup %1110 }
 0x261   :  { %v275_v24 = vadd.f32 1.0, %v1111_v23 }
 0x263   :  { %1112 = vrcp.f32 %v275_v24 }
 0x270   :  { %v1113_v38 = vpop.eup %1112 }
 0x271   :  { %v288_v40 = vrot.slane %v1113_v38, %v1303_v33  ;;  %v281_v41 = vrot.slane %v1113_v38, %v1306_v34 }
 0x273   :  { %290 = vbcast.lane.b32.xlu1 %v288_v40, 256  ;;  %283 = vbcast.lane.b32.xlu0 %v281_v41, 256 }
 0x2e5   :  { %v291_v48 = vpop.permute.xlu1 %290  ;;  %v284_v49 = vpop.permute.xlu0 %283 }
 0x2e6   :  { %v1311_v50 = vmul.f32 %v291_v48, %v1286_v2  ;;  %v1314_v51 = vmul.f32 %v291_v48, %v1292_v5  ;;  %v1317_v52 = vmul.f32 %v284_v49, %v1282_v0  ;;  %v1320_v53 = vmul.f32 %v284_v49, %v1284_v1 }
 0x2e8   :  { %v308_v54 = vrot.slane %v1311_v50, 4  ;;  %v314_v55 = vrot.slane %v1314_v51, 4  ;;  %v296_v56 = vrot.slane %v1317_v52, 4  ;;  %v302_v57 = vrot.slane %v1320_v53, 4 }
 0x2ea   :  { %v309_v2 = vmax.f32 %v1311_v50, %v308_v54  ;;  %v315_v58 = vmax.f32 %v1314_v51, %v314_v55  ;;  %v333_v5 = vadd.f32 %v308_v54, %v1311_v50  ;;  %v339_v0 = vadd.f32 %v314_v55, %v1314_v51 }
 0x2eb   :  { %v297_v59 = vmax.f32 %v1317_v52, %v296_v56  ;;  %v303_v1 = vmax.f32 %v1320_v53, %v302_v57  ;;  %v321_v60 = vadd.f32 %v296_v56, %v1317_v52  ;;  %v327_v61 = vadd.f32 %v302_v57, %v1320_v53 }
 0x2ec   :  { %v310_v62 = vrot.slane %v309_v2, 2  ;;  %v316_v63 = vrot.slane %v315_v58, 2  ;;  %v334_v3 = vrot.slane %v333_v5, 2  ;;  %v340_v4 = vrot.slane %v339_v0, 2 }
 0x2ed   :  { %v298_v6 = vrot.slane %v297_v59, 2  ;;  %v304_v7 = vrot.slane %v303_v1, 2  ;;  %v322_v8 = vrot.slane %v321_v60, 2  ;;  %v328_v9 = vrot.slane %v327_v61, 2 }
 0x2ee   :  { %v311_v10 = vmax.f32 %v309_v2, %v310_v62  ;;  %v317_v11 = vmax.f32 %v315_v58, %v316_v63  ;;  %v335_v13 = vadd.f32 %v334_v3, %v333_v5  ;;  %v341_v14 = vadd.f32 %v340_v4, %v339_v0 }
 0x2ef   :  { %v299_v15 = vmax.f32 %v297_v59, %v298_v6  ;;  %v305_v16 = vmax.f32 %v303_v1, %v304_v7  ;;  %v323_v17 = vadd.f32 %v322_v8, %v321_v60  ;;  %v329_v18 = vadd.f32 %v328_v9, %v327_v61 }
 0x2f0   :  { %v312_v19 = vrot.slane %v311_v10, 1  ;;  %v336_v20 = vrot.slane %v335_v13, 1  ;;  %v318_v21 = vrot.slane %v317_v11, 1  ;;  %v342_v22 = vrot.slane %v341_v14, 1 }
 0x2f1   :  { %v300_v23 = vrot.slane %v299_v15, 1  ;;  %v324_v24 = vrot.slane %v323_v17, 1  ;;  %v306_v25 = vrot.slane %v305_v16, 1  ;;  %v330_v26 = vrot.slane %v329_v18, 1 }
 0x2f2   :  { %v337_v27 = vadd.f32 %v336_v20, %v335_v13  ;;  %v319_v28 = vmax.f32 %v317_v11, %v318_v21  ;;  %v313_v29 = vmax.f32 %v311_v10, %v312_v19  ;;  %v343_v30 = vadd.f32 %v342_v22, %v341_v14 }
 0x2f3   :  { %v325_v31 = vadd.f32 %v324_v24, %v323_v17  ;;  %v307_v32 = vmax.f32 %v305_v16, %v306_v25  ;;  %v301_v35 = vmax.f32 %v299_v15, %v300_v23  ;;  %v331_v36 = vadd.f32 %v330_v26, %v329_v18 }
 0x2f4   :  { %v348_v37 = vmul.f32 0.125, %v343_v30  ;;  %v347_v38 = vmul.f32 0.125, %v337_v27  ;;  %v1240_v4 = vmov 1966171168  }
 0x2f5   :  { %v354_v39 = vsel %vm100_vm1, %v319_v28, %v307_v32  ;;  %v353_v40 = vsel %vm100_vm1, %v313_v29, %v301_v35  ;;  %v346_v41 = vmul.f32 0.125, %v331_v36  ;;  %v345_v42 = vmul.f32 0.125, %v325_v31 }
 0x2f6   :  { %v366_v43 = vpack.c.bf16 %v354_v39, %v354_v39  ;;  %v365_v44 = vpack.c.bf16 %v353_v40, %v353_v40  ;;  %v851_v6 = vunpack.c.l.s4 %v1240_v4 }
 0x2f7   :  { %v362_v45 = vsel %vm100_vm1, %v348_v37, %v346_v41  ;;  %v361_v46 = vsel %vm100_vm1, %v347_v38, %v345_v42 }
 0x2f8   :  { %785 = vmatprep.mubr.bf16.mxu0 %v366_v43  ;;  %v368_v47 = vpack.c.bf16 %v362_v45, %v362_v45  ;;  %v367_v48 = vpack.c.bf16 %v361_v46, %v361_v46  ;;  %v852_v7 = vunpack.c.0.s8 %v851_v6 }
 0x2f9   :  { %786 = vmatmul.mubr.bf16.vlgmr.msra.gmra.mxu0 %v365_v44 }
 0x2fa   :  { %826 = vmatprep.mubr.bf16.mxu1 %v368_v47  ;;  %v855_v9 = vsub.s32 %v852_v7, %v1298_v12 }
 0x2fb   :  { %827 = vmatmul.mubr.bf16.vlgmr.msra.gmra.mxu1 %v367_v48 }
 0x3b9   :  { %v787_v49 = vpop.f32.mrf.mxu0 }
 0x3bb   :  { %v789_v54 = vpop.f32.mrf.mxu0  ;;  %v828_v55 = vpop.f32.mrf.mxu1 }
 0x3bc   :  { %v829_v56 = vadd.f32 %v828_v55, %v787_v49 }
 0x3bd   :  { %v791_v57 = vpop.f32.mrf.mxu0  ;;  %v830_v2 = vpop.f32.mrf.mxu1 }
 0x3be   :  { %v986_v58 = vmul.f32 -1.442695, %v829_v56  ;;  %v831_v5 = vadd.f32 %v830_v2, %v789_v54 }
 0x3bf   :  { %v792_v0 = vpop.f32.mrf.mxu0  ;;  %v832_v59 = vpop.f32.mrf.mxu1 }
 0x3c0   :  { %1114 = vpow2.f32 %v986_v58  ;;  %v987_v1 = vmul.f32 -1.442695, %v831_v5 }
 0x3c1   :  { %v833_v60 = vpop.f32.mrf.mxu1 }
 0x3c2   :  { %1116 = vpow2.f32 %v987_v1 }
 0x3cd   :  { %v1115_v61 = vpop.eup %1114 }
 0x3ce   :  { %v841_v62 = vadd.f32 1.0, %v1115_v61 }
 0x3cf   :  { %v1117_v63 = vpop.eup %1116 }
 0x3d0   :  { %v842_v3 = vadd.f32 1.0, %v1117_v63  ;;  %1118 = vrcp.f32 %v841_v62 }
 0x3d2   :  { %1120 = vrcp.f32 %v842_v3 }
 0x3dd   :  { %v1119_v8 = vpop.eup %1118 }
 0x3df   :  { %v1121_v10 = vpop.eup %1120 }
 0x3e0   :  { %v849_v11 = vcombine.low %v1119_v8, %v1121_v10 }
 0x3e2   :  { %v856_v13 = vrot.slane %v849_v11, %v855_v9 }
 0x3e4   :  { %v857_v14 = vcombine.high %v856_v13, %v856_v13  ;;  %v864_v15 = vrot.slane %v856_v13, %v855_v9 }
 0x3e6   :  { %v871_v16 = vrot.slane %v857_v14, %v855_v9  ;;  %v875_v17 = vrot.slane %v864_v15, %v1306_v34  ;;  %v879_v18 = vrot.slane %v864_v15, %v1303_v33 }
 0x3e8   :  { %v883_v19 = vrot.slane %v871_v16, %v1306_v34  ;;  %v887_v20 = vrot.slane %v871_v16, %v1303_v33  ;;  %v892_v21 = vmul.f32 %v875_v17, %v1317_v52  ;;  %v893_v12 = vmul.f32 %v879_v18, %v1320_v53 }
 0x3ea   :  { %v894_v22 = vmul.f32 %v883_v19, %v1311_v50  ;;  %v895_v23 = vmul.f32 %v887_v20, %v1314_v51  ;;  %896 = vst [vmem:[#allocation10] sm:$0xff] %v892_v21  ;;  %897 = vst [vmem:[#allocation10 + $0x8] sm:$0xff] %v893_v12 }
 0x3ec   :  { %898 = vst [vmem:[#allocation10 + $0x10] sm:$0xff] %v894_v22  ;;  %899 = vst [vmem:[#allocation10 + $0x18] sm:$0xff] %v895_v23 }
 0x3ed   :  { %1213 = shalt.err (!%p1210_p10)
}
 0x3ee   :  { %911 = dma.vmem_to_hbm [thread:$0]  %s906_s3, 512, %s1357_s4, [#allocation4], %s1232_s23, %s1232_s23, %s1233_s24  }
 0x3ef   :  { %1228 = dma.done.wait [#allocation4], 512  }
 0x3f0   :  { %1229 = vsyncadd [#allocation4], 4294966784 }
 0x3f1   :  { %915 = vsyncpa [#allocation3], 1 }
 0x3f2   :  { %916 = vsyncpa [#allocation6], 1 }
 0x3f3   :  { %917 = vsyncpa [#allocation9], 1 }
 0x3f4   :  { %918 = vsyncpa [#allocation4], 1 }

</bundles_post_ra>
